<compile_context>
chip_gen: v7x
topology: tpu7x:2x2x1
jax: 0.10.0
libtpu: 0.0.40
codegen_flags: <defaults>
</compile_context>

<pallas_src>
import functools

import numpy as np
import jax
import jax.numpy as jnp
from jax.experimental import pallas as pl
from jax.experimental.pallas import tpu as pltpu


# ------------------------------ Pallas kernel -------------------------------
def _decomp_kernel(a_ref, x_ref, res_ref, mean_ref, *, tiles, kstrip, inv_k):
    """One grid step: (BB, L, TD) slab of x -> res and mean for the same slab.

    a_ref : (n_strips, tq, kstrip) integer tap counts; edge replication is
            baked in via clamped columns.  dtype == x dtype.
    tiles : static tuple of (row_start, rows, window_start) per L-strip.
    """
    bb = x_ref.shape[0]
    for b in range(bb):                                  # static batch block
        for q, (r0, rows, start) in enumerate(tiles):    # static L-strips
            # (kstrip, TD) window covering every (clamped) tap of strip q
            xw = x_ref[b, pl.ds(start, kstrip), :]
            # banded moving-sum on the MXU, f32 accumulation
            acc = jnp.dot(a_ref[q], xw, preferred_element_type=jnp.float32)
            m = (acc * inv_k).astype(mean_ref.dtype)     # 1/k on the VPU (f32)
            if rows != m.shape[0]:                       # partial last strip
                m = m[:rows]
            xr = x_ref[b, pl.ds(r0, rows), :]
            mean_ref[b, pl.ds(r0, rows), :] = m
            res_ref[b, pl.ds(r0, rows), :] = (xr - m).astype(res_ref.dtype)


# --------------------------- host-side tiling helpers ------------------------
def _round_up(x, m):
    return ((x + m - 1) // m) * m


def _choose_l_tiling(L, pad):
    """Pick (tq, kstrip): rows per band strip, columns per x window.

    Banded strips only pay off when ceil(L/tq)*tq*kstrip < L*L; otherwise fall
    back to a single dense (L, L) strip (short series)."""
    best, best_cost = (L, L), L * L
    for tq in (256, 128):                     # keep the MXU M-dim reasonably full
        if tq >= L:
            continue
        kstrip = _round_up(tq + 2 * pad + 7, 8)   # +7 slack for 8-aligned window starts
        if kstrip >= L:
            continue
        cost = -(-L // tq) * tq * kstrip
        if cost < best_cost:
            best, best_cost = (tq, kstrip), cost
    return best


def _build_band_strips(L, kernel_size, tq, kstrip):
    """Banded averaging strips (integer tap counts) + per-strip window starts.

    strips[q] @ x[start_q : start_q+kstrip] == kernel_size * moving_avg(x)[q*tq : q*tq+tq]
    Edge replication is baked in by clamping column indices (counts pile up at
    the clamped edges)."""
    pad = (kernel_size - 1) // 2
    n_strips = -(-L // tq)
    strips = np.zeros((n_strips, tq, kstrip), np.float32)
    tiles = []
    for q in range(n_strips):
        r0 = q * tq
        rows = min(tq, L - r0)
        lo = max(r0 - pad, 0)                    # smallest clamped column used
        hi = min(r0 + rows - 1 + pad, L - 1)     # largest clamped column used
        start = min(lo, max(L - kstrip, 0))
        aligned = (start // 8) * 8               # prefer sublane-aligned windows
        if aligned + kstrip > hi:
            start = aligned
        assert start <= lo and hi < start + kstrip, "band window too narrow"
        rr = np.arange(rows)[:, None]
        cols = np.clip(rr + r0 + np.arange(kernel_size)[None, :] - pad, 0, L - 1) - start
        np.add.at(strips[q], (np.broadcast_to(rr, cols.shape), cols), 1.0)
        tiles.append((int(r0), int(rows), int(start)))
    return strips, tuple(tiles)


def _pick_d_tile(D):
    """Lane-dim tile: full D when small, else a 128-multiple that divides D."""
    if D <= 256:
        return D
    for td in (512, 256, 128):
        if D % td == 0:
            return td
    return D   # TODO(synk): large non-128-multiple D keeps one full-D block


def _pick_batch_block(B, per_batch_bytes, n_d_blocks):
    """Batches per grid step: amortize ~0.35us/step overhead for tiny slabs,
    while keeping >= 2 grid steps when possible so both v7x TensorCores work."""
    target = 512 << 10
    bb = 1
    if per_batch_bytes < target:
        bb = min(B, max(1, target // max(per_batch_bytes, 1)))
        while B % bb != 0:
            bb -= 1
    while bb > 1 and (B // bb) * n_d_blocks < 2:
        bb -= 1
        while B % bb != 0:
            bb -= 1
    return int(bb)


def _const_input_spec(block_shape, index_map):
    """BlockSpec for an input whose block index never changes: one pipeline
    buffer suffices (halves its VMEM).  Fall back if the kwarg is unavailable."""
    try:
        return pl.BlockSpec(block_shape, index_map, pipeline_mode=pl.Buffered(1))
    except TypeError:
        return pl.BlockSpec(block_shape, index_map)


# ------------------------------ wrapper --------------------------------------
def series_decomp(x, kernel_size):
    if kernel_size % 2 != 1:
        # Even k: AvgPool1d over the replication-padded series yields L-1
        # outputs and the PyTorch module's `x - moving_mean` shape-mismatches.
        raise ValueError("series_decomp requires an odd kernel_size")
    B, L, D = x.shape
    pad = (kernel_size - 1) // 2

    tq, kstrip = _choose_l_tiling(L, pad)
    strips_np, tiles = _build_band_strips(L, kernel_size, tq, kstrip)
    n_strips = strips_np.shape[0]
    # Integer tap counts are exact in bf16/f32; cast A to the input dtype so
    # bf16 activations use the native bf16 MXU path; 1/k is applied in f32.
    A = jnp.asarray(strips_np, dtype=x.dtype)

    itemsize = x.dtype.itemsize
    TD = _pick_d_tile(D)
    n_d = D // TD
    BB = _pick_batch_block(B, L * TD * itemsize, n_d)
    n_b = B // BB

    # VMEM budget: A (single-buffered) + 3 double-buffered (BB, L, TD) blocks.
    blk = BB * L * TD * itemsize
    vmem_need = int(strips_np.size) * itemsize + 3 * 2 * blk + (2 << 20)
    # TODO(synk): if vmem_need ever exceeds 64 MiB (v7x physical), shrink TD/BB.
    vmem_limit = int(min(max(vmem_need, 32 << 20), 64 << 20))

    kernel = functools.partial(_decomp_kernel, tiles=tiles, kstrip=kstrip,
                               inv_k=1.0 / kernel_size)
    xio_spec = lambda: pl.BlockSpec((BB, L, TD), lambda i, j: (i, 0, j))

    res, mean = pl.pallas_call(
        kernel,
        out_shape=(jax.ShapeDtypeStruct((B, L, D), x.dtype),    # res
                   jax.ShapeDtypeStruct((B, L, D), x.dtype)),   # moving_mean
        grid=(n_b, n_d),
        in_specs=[_const_input_spec((n_strips, tq, kstrip), lambda i, j: (0, 0, 0)),
                  xio_spec()],
        out_specs=(xio_spec(), xio_spec()),
        compiler_params=pltpu.CompilerParams(
            dimension_semantics=("parallel", "parallel"),
            vmem_limit_bytes=vmem_limit),
    )(A, x)
    return res, mean


# ------------------------- pure-JAX reference (check) ------------------------
def _series_decomp_ref(x, k):
    pad = (k - 1) // 2
    front = jnp.repeat(x[:, :1, :], pad, axis=1)
    end = jnp.repeat(x[:, -1:, :], pad, axis=1)
    xpad = jnp.concatenate([front, x, end], axis=1)
    L = x.shape[1]
    mean = sum(xpad[:, t:t + L, :] for t in range(k)) / k
    return x - mean, mean


if __name__ == "__main__":
    # Config 1: banded multi-strip path + batch/D blocking.
    B, L, D, kernel_size = 2, 256, 32, 25
    x = jax.random.normal(jax.random.PRNGKey(0), (B, L, D), dtype=jnp.float32)
    fn = jax.jit(functools.partial(series_decomp, kernel_size=kernel_size))
    res, mean = fn(x)
    jax.block_until_ready((res, mean))

    res_r, mean_r = _series_decomp_ref(x, kernel_size)
    assert res.shape == (B, L, D) and mean.shape == (B, L, D)
    assert bool(jnp.all(jnp.isfinite(res))) and bool(jnp.all(jnp.isfinite(mean)))
    assert jnp.allclose(mean, mean_r, atol=1e-5, rtol=1e-5)
    assert jnp.allclose(res, res_r, atol=1e-5, rtol=1e-5)

    # Config 2: short / ragged series -> dense fallback path, odd batch count.
    B2, L2, D2, k2 = 3, 40, 16, 7
    x2 = jax.random.normal(jax.random.PRNGKey(1), (B2, L2, D2), dtype=jnp.float32)
    res2, mean2 = jax.jit(functools.partial(series_decomp, kernel_size=k2))(x2)
    jax.block_until_ready((res2, mean2))
    res2_r, mean2_r = _series_decomp_ref(x2, k2)
    assert jnp.allclose(mean2, mean2_r, atol=1e-5, rtol=1e-5)
    assert jnp.allclose(res2, res2_r, atol=1e-5, rtol=1e-5)

    print("KERNEL_OK")
</pallas_src>

<mosaic_0001>
module attributes {stable_mosaic.version = 11 : i64} {
  func.func @_decomp_kernel(%arg0: i32, %arg1: i32, %arg2: memref<2x128x160xf32, #tpu.memory_space<vmem>>, %arg3: memref<1x256x32xf32, #tpu.memory_space<vmem>>, %arg4: memref<1x256x32xf32, #tpu.memory_space<vmem>>, %arg5: memref<1x256x32xf32, #tpu.memory_space<vmem>>) attributes {dimension_semantics = [#tpu.dimension_semantics<parallel>, #tpu.dimension_semantics<parallel>], iteration_bounds = array<i64: 2, 1>, scalar_prefetch = 0 : i64, scratch_operands = 0 : i64, tpu.core_type = #tpu.core_type<tc>, window_params = [{pipeline_mode = #tpu.pipeline_mode<synchronous>, transform_indices = @transform_0, window_bounds = array<i64: 2, 128, 160>}, {transform_indices = @transform_1, window_bounds = array<i64: 1, 256, 32>}, {transform_indices = @transform_2, window_bounds = array<i64: 1, 256, 32>}, {transform_indices = @transform_3, window_bounds = array<i64: 1, 256, 32>}]} {
    %c0 = arith.constant 0 : index
    %c0_0 = arith.constant 0 : index
    %c0_1 = arith.constant 0 : index
    %0 = vector.load %arg3[%c0, %c0_0, %c0_1] : memref<1x256x32xf32, #tpu.memory_space<vmem>>, vector<1x160x32xf32>
    %1 = vector.shape_cast %0 : vector<1x160x32xf32> to vector<160x32xf32>
    %c0_2 = arith.constant 0 : index
    %c0_3 = arith.constant 0 : index
    %c0_4 = arith.constant 0 : index
    %2 = vector.load %arg2[%c0_2, %c0_3, %c0_4] : memref<2x128x160xf32, #tpu.memory_space<vmem>>, vector<1x128x160xf32>
    %3 = vector.shape_cast %2 : vector<1x128x160xf32> to vector<128x160xf32>
    %cst = arith.constant dense<0.000000e+00> : vector<128x32xf32>
    %4 = tpu.matmul %3, %1, %cst {dimension_numbers = #tpu.dot_dimension_numbers<[1], [0], [0], [1], [0, 0, 1, 1], [], []>} : vector<128x160xf32>, vector<160x32xf32>, vector<128x32xf32> -> vector<128x32xf32>
    %cst_5 = arith.constant 4.000000e-02 : f32
    %5 = vector.broadcast %cst_5 : f32 to vector<128x32xf32>
    %6 = arith.mulf %4, %5 : vector<128x32xf32>
    %c0_6 = arith.constant 0 : index
    %c0_7 = arith.constant 0 : index
    %c0_8 = arith.constant 0 : index
    %7 = vector.load %arg3[%c0_6, %c0_7, %c0_8] : memref<1x256x32xf32, #tpu.memory_space<vmem>>, vector<1x128x32xf32>
    %8 = vector.shape_cast %7 : vector<1x128x32xf32> to vector<128x32xf32>
    %c0_9 = arith.constant 0 : index
    %c0_10 = arith.constant 0 : index
    %c0_11 = arith.constant 0 : index
    %9 = vector.load %arg5[%c0_9, %c0_10, %c0_11] : memref<1x256x32xf32, #tpu.memory_space<vmem>>, vector<1x128x32xf32>
    %10 = vector.shape_cast %9 : vector<1x128x32xf32> to vector<128x32xf32>
    %11 = vector.shape_cast %6 : vector<128x32xf32> to vector<1x128x32xf32>
    tpu.vector_store %arg5[%c0_9, %c0_10, %c0_11], %11 {strides = array<i32>} : memref<1x256x32xf32, #tpu.memory_space<vmem>>, vector<1x128x32xf32>,
    %12 = arith.subf %8, %6 : vector<128x32xf32>
    %c0_12 = arith.constant 0 : index
    %c0_13 = arith.constant 0 : index
    %c0_14 = arith.constant 0 : index
    %13 = vector.load %arg4[%c0_12, %c0_13, %c0_14] : memref<1x256x32xf32, #tpu.memory_space<vmem>>, vector<1x128x32xf32>
    %14 = vector.shape_cast %13 : vector<1x128x32xf32> to vector<128x32xf32>
    %15 = vector.shape_cast %12 : vector<128x32xf32> to vector<1x128x32xf32>
    tpu.vector_store %arg4[%c0_12, %c0_13, %c0_14], %15 {strides = array<i32>} : memref<1x256x32xf32, #tpu.memory_space<vmem>>, vector<1x128x32xf32>,
    %c0_15 = arith.constant 0 : index
    %c96 = arith.constant 96 : index
    %c0_16 = arith.constant 0 : index
    %16 = vector.load %arg3[%c0_15, %c96, %c0_16] : memref<1x256x32xf32, #tpu.memory_space<vmem>>, vector<1x160x32xf32>
    %17 = vector.shape_cast %16 : vector<1x160x32xf32> to vector<160x32xf32>
    %c1 = arith.constant 1 : index
    %c0_17 = arith.constant 0 : index
    %c0_18 = arith.constant 0 : index
    %18 = vector.load %arg2[%c1, %c0_17, %c0_18] : memref<2x128x160xf32, #tpu.memory_space<vmem>>, vector<1x128x160xf32>
    %19 = vector.shape_cast %18 : vector<1x128x160xf32> to vector<128x160xf32>
    %cst_19 = arith.constant dense<0.000000e+00> : vector<128x32xf32>
    %20 = tpu.matmul %19, %17, %cst_19 {dimension_numbers = #tpu.dot_dimension_numbers<[1], [0], [0], [1], [0, 0, 1, 1], [], []>} : vector<128x160xf32>, vector<160x32xf32>, vector<128x32xf32> -> vector<128x32xf32>
    %cst_20 = arith.constant 4.000000e-02 : f32
    %21 = vector.broadcast %cst_20 : f32 to vector<128x32xf32>
    %22 = arith.mulf %20, %21 : vector<128x32xf32>
    %c0_21 = arith.constant 0 : index
    %c128 = arith.constant 128 : index
    %c0_22 = arith.constant 0 : index
    %23 = vector.load %arg3[%c0_21, %c128, %c0_22] : memref<1x256x32xf32, #tpu.memory_space<vmem>>, vector<1x128x32xf32>
    %24 = vector.shape_cast %23 : vector<1x128x32xf32> to vector<128x32xf32>
    %c0_23 = arith.constant 0 : index
    %c128_24 = arith.constant 128 : index
    %c0_25 = arith.constant 0 : index
    %25 = vector.load %arg5[%c0_23, %c128_24, %c0_25] : memref<1x256x32xf32, #tpu.memory_space<vmem>>, vector<1x128x32xf32>
    %26 = vector.shape_cast %25 : vector<1x128x32xf32> to vector<128x32xf32>
    %27 = vector.shape_cast %22 : vector<128x32xf32> to vector<1x128x32xf32>
    tpu.vector_store %arg5[%c0_23, %c128_24, %c0_25], %27 {strides = array<i32>} : memref<1x256x32xf32, #tpu.memory_space<vmem>>, vector<1x128x32xf32>,
    %28 = arith.subf %24, %22 : vector<128x32xf32>
    %c0_26 = arith.constant 0 : index
    %c128_27 = arith.constant 128 : index
    %c0_28 = arith.constant 0 : index
    %29 = vector.load %arg4[%c0_26, %c128_27, %c0_28] : memref<1x256x32xf32, #tpu.memory_space<vmem>>, vector<1x128x32xf32>
    %30 = vector.shape_cast %29 : vector<1x128x32xf32> to vector<128x32xf32>
    %31 = vector.shape_cast %28 : vector<128x32xf32> to vector<1x128x32xf32>
    tpu.vector_store %arg4[%c0_26, %c128_27, %c0_28], %31 {strides = array<i32>} : memref<1x256x32xf32, #tpu.memory_space<vmem>>, vector<1x128x32xf32>,
    return
  }
  func.func @transform_0(%arg0: i32, %arg1: i32) -> (i32, i32, i32) {
    %c0_i32 = arith.constant 0 : i32
    %c0_i32_0 = arith.constant 0 : i32
    %c0_i32_1 = arith.constant 0 : i32
    %c0_i32_2 = arith.constant 0 : i32
    return %c0_i32, %c0_i32_0, %c0_i32_1 : i32, i32, i32
  }
  func.func @transform_1(%arg0: i32, %arg1: i32) -> (i32, i32, i32) {
    %c0_i32 = arith.constant 0 : i32
    %c0_i32_0 = arith.constant 0 : i32
    return %arg0, %c0_i32, %arg1 : i32, i32, i32
  }
  func.func @transform_2(%arg0: i32, %arg1: i32) -> (i32, i32, i32) {
    %c0_i32 = arith.constant 0 : i32
    %c0_i32_0 = arith.constant 0 : i32
    return %arg0, %c0_i32, %arg1 : i32, i32, i32
  }
  func.func @transform_3(%arg0: i32, %arg1: i32) -> (i32, i32, i32) {
    %c0_i32 = arith.constant 0 : i32
    %c0_i32_0 = arith.constant 0 : i32
    return %arg0, %c0_i32, %arg1 : i32, i32, i32
  }
}

</mosaic_0001>

<bundles_post_ra>
// kernel: series_decomp.1
= control target key start
LH: loop header
LB: loop body
LE: loop exit
PB: predicated region body
PF: predicated region fallthrough
CT: control target
= control target key end

     0   :  { %s1199_s12 = smov 0   ;;  %s1201_s13 = smov 0   ;;  %s1778_s0 = inlined_call_operand.vmem [shape: f32[2,128,160], index: 0, kind: input, shape index: {}]   ;;  %s1779_s1 = inlined_call_operand.vmem [shape: f32[2,256,32], index: 1, kind: input, shape index: {}]   ;;  %s1780_s2 = inlined_call_operand.vmem [shape: f32[2,256,32], index: 2, kind: output, shape index: {0}]   ;;  %s1781_s3 = inlined_call_operand.vmem [shape: f32[2,256,32], index: 3, kind: output, shape index: {1}]  }
   0x1   :  { %s1203_s14 = smov 0  }
   0x2 LB: > { %s26_s15 = sadd.s32 1, %s1172_s13  ;;  %p993_p0 = scmp.ge.s32.totalorder %s1176_s14, 1  ;;  %s1176_s14 = sphi %s1203_s14, %s14_s14   ;;  %s1172_s13 = sphi %s1201_s13, %s1783_s13   ;;  %s1168_s12 = sphi %s1199_s12, %s1782_s12  }
   0x3   : > { %p28_p1 = scmp.ge.s32.totalorder %s26_s15, 2  ;;  %p161_p2 = scmp.lt.s32.totalorder %s1176_s14, 3 }
   0x5   : > { %s1785_s15 = smov (%p28_p1, %s26_s15), 0  ;;  %p162_p3 = pnand %p993_p0, %p161_p2 }
   0x6   : > { %p199_p4 = scmp.lt.s32.totalorder (!%p162_p3), %s1168_s12, 1  ;;  %v244_v0 = vld [vmem:[%s1778_s0 + $0x8] sm:$0xff] (!%p162_p3)  ;;  %vm275_vm0 = vcmask (!%p162_p3), 261120   ;;  %v1178_v2 = vmov (!%p162_p3), 0.0|0.0   ;;  %v243_v51 = vld [vmem:[%s1778_s0] sm:$0xff] (!%p162_p3)  ;;  %v246_v53 = vld [vmem:[%s1778_s0 + $0x18] sm:$0xff] (!%p162_p3) }
   0x7   : > { %165 = sbr.rel (%p162_p3) target bundleno = 337 (0x151), region = 28  ;;  %v1017_v1 = vld [vmem:[%s1778_s0 + $0x108] sm:$0xff] (!%p162_p3)  ;;  %1069 = vmatprep.subr.bf16.mxu0 (!%p162_p3), %v1178_v2  ;;  %1099 = vmatprep.subr.bf16.mxu1 (!%p162_p3), %v1178_v2  ;;  %v1016_v52 = vld [vmem:[%s1778_s0 + $0x100] sm:$0xff] (!%p162_p3)  ;;  %v1019_v54 = vld [vmem:[%s1778_s0 + $0x118] sm:$0xff] (!%p162_p3) }
   0x8   : > { %1000 = vmatprep.mubr.msk.f32.mxu0 (!%p162_p3), %vm275_vm0, %v244_v0  ;;  %1048 = vmatprep.mubr.msk.f32.mxu1 (!%p162_p3), %vm275_vm0, %v1017_v1  ;;  %v245_v55 = vld [vmem:[%s1778_s0 + $0x10] sm:$0xff] (!%p162_p3)  ;;  %v248_v57 = vld [vmem:[%s1778_s0 + $0x28] sm:$0xff] (!%p162_p3)  ;;  %v247_v59 = vld [vmem:[%s1778_s0 + $0x20] sm:$0xff] (!%p162_p3) }
   0x9   : > { %v1018_v56 = vld [vmem:[%s1778_s0 + $0x110] sm:$0xff] (!%p162_p3)  ;;  %v1021_v58 = vld [vmem:[%s1778_s0 + $0x128] sm:$0xff] (!%p162_p3)  ;;  %v1020_v60 = vld [vmem:[%s1778_s0 + $0x120] sm:$0xff] (!%p162_p3) }
   0xa   : > { %v250_v61 = vld [vmem:[%s1778_s0 + $0x38] sm:$0xff] (!%p162_p3)  ;;  %v249_v63 = vld [vmem:[%s1778_s0 + $0x30] sm:$0xff] (!%p162_p3)  ;;  %v252_v1 = vld [vmem:[%s1778_s0 + $0x48] sm:$0xff] (!%p162_p3) }
   0xb   : > { %v1023_v62 = vld [vmem:[%s1778_s0 + $0x138] sm:$0xff] (!%p162_p3)  ;;  %v1022_v0 = vld [vmem:[%s1778_s0 + $0x130] sm:$0xff] (!%p162_p3) }
   0xe   : > { %s1787_s12 = smov (!%p199_p4, %s1168_s12), 1 }
   0xf   : > { %s1227_s20 = sshll.u32 %s1787_s12, 8 }
  0x10   : > { %s1233_s23 = scalar_lea.vmem %s1779_s1, %s1227_s20  ;;  %s1601_s8 = scalar_lea.vmem %s1781_s3, %s1227_s20 }
  0x11   : > { %v1236_v3 = vld [vmem:[%s1233_s23] sm:$0xff]  ;;  %v1239_v4 = vld [vmem:[%s1233_s23 + $0x8] sm:$0xff]  ;;  %v1250_v8 = vld [vmem:[%s1233_s23 + $0x10] sm:$0xff]  ;;  %s1607_s11 = scalar_lea.vmem %s1780_s2, %s1227_s20 }
  0x12   : > { %v1242_v5 = vld [vmem:[%s1233_s23 + $0x60] sm:$0xff]  ;;  %v1070_v6 = vpack.c.bf16 %v1239_v4, %v1236_v3  ;;  %v1247_v7 = vld [vmem:[%s1233_s23 + $0x68] sm:$0xff]  ;;  %v1253_v9 = vld [vmem:[%s1233_s23 + $0x18] sm:$0xff] }
  0x13   : > { %v1100_v10 = vpack.c.bf16 %v1247_v7, %v1242_v5  ;;  %v1258_v11 = vld [vmem:[%s1233_s23 + $0x70] sm:$0xff]  ;;  %v1261_v12 = vld [vmem:[%s1233_s23 + $0x78] sm:$0xff]  ;;  %v1073_v13 = vpack.c.bf16 %v1253_v9, %v1250_v8  ;;  %v1269_v15 = vld [vmem:[%s1233_s23 + $0x20] sm:$0xff] }
  0x14   : > { %1071 = vmatpush1.bf16.msra.mxu0 %v1070_v6  ;;  %v1103_v14 = vpack.c.bf16 %v1261_v12, %v1258_v11  ;;  %v1272_v16 = vld [vmem:[%s1233_s23 + $0x28] sm:$0xff]  ;;  %v1276_v17 = vld [vmem:[%s1233_s23 + $0x80] sm:$0xff]  ;;  %v1287_v21 = vld [vmem:[%s1233_s23 + $0x30] sm:$0xff] }
  0x15   : > { %1101 = vmatpush1.bf16.msra.mxu1 %v1100_v10  ;;  %1072 = vmatprep.subr.bf16.mxu0 %v1178_v2  ;;  %v1279_v18 = vld [vmem:[%s1233_s23 + $0x88] sm:$0xff]  ;;  %v1076_v19 = vpack.c.bf16 %v1272_v16, %v1269_v15  ;;  %v1290_v22 = vld [vmem:[%s1233_s23 + $0x38] sm:$0xff]  ;;  %v1294_v23 = vld [vmem:[%s1233_s23 + $0x90] sm:$0xff] }
  0x16   : > { %1102 = vmatprep.subr.bf16.mxu1 %v1178_v2  ;;  %v1106_v20 = vpack.c.bf16 %v1279_v18, %v1276_v17  ;;  %v1297_v24 = vld [vmem:[%s1233_s23 + $0x98] sm:$0xff]  ;;  %v1079_v25 = vpack.c.bf16 %v1290_v22, %v1287_v21  ;;  %v1305_v27 = vld [vmem:[%s1233_s23 + $0x40] sm:$0xff]  ;;  %v1308_v28 = vld [vmem:[%s1233_s23 + $0x48] sm:$0xff] }
  0x17   : > { %v1109_v26 = vpack.c.bf16 %v1297_v24, %v1294_v23  ;;  %v1312_v29 = vld [vmem:[%s1233_s23 + $0xa0] sm:$0xff]  ;;  %v1315_v30 = vld [vmem:[%s1233_s23 + $0xa8] sm:$0xff]  ;;  %v1082_v31 = vpack.c.bf16 %v1308_v28, %v1305_v27  ;;  %v1323_v33 = vld [vmem:[%s1233_s23 + $0x50] sm:$0xff] }
  0x18   : > { %1074 = vmatpush1.bf16.msra.mxu0 %v1073_v13  ;;  %v1112_v32 = vpack.c.bf16 %v1315_v30, %v1312_v29  ;;  %v1326_v34 = vld [vmem:[%s1233_s23 + $0x58] sm:$0xff]  ;;  %v1330_v35 = vld [vmem:[%s1233_s23 + $0xb0] sm:$0xff]  ;;  %v1342_v39 = vld [vmem:[%s1233_s23 + $0xc0] sm:$0xff] }
  0x19   : > { %1104 = vmatpush1.bf16.msra.mxu1 %v1103_v14  ;;  %1075 = vmatprep.subr.bf16.mxu0 %v1178_v2  ;;  %v1333_v36 = vld [vmem:[%s1233_s23 + $0xb8] sm:$0xff]  ;;  %v1085_v37 = vpack.c.bf16 %v1326_v34, %v1323_v33  ;;  %v1345_v40 = vld [vmem:[%s1233_s23 + $0xc8] sm:$0xff]  ;;  %v1352_v42 = vld [vmem:[%s1233_s23 + $0xd0] sm:$0xff] }
  0x1a   : > { %1105 = vmatprep.subr.bf16.mxu1 %v1178_v2  ;;  %v1115_v38 = vpack.c.bf16 %v1333_v36, %v1330_v35  ;;  %v1118_v41 = vpack.c.bf16 %v1345_v40, %v1342_v39  ;;  %v1355_v43 = vld [vmem:[%s1233_s23 + $0xd8] sm:$0xff]  ;;  %v1362_v45 = vld [vmem:[%s1233_s23 + $0xe0] sm:$0xff]  ;;  %v1365_v46 = vld [vmem:[%s1233_s23 + $0xe8] sm:$0xff] }
  0x1b   : > { %v1121_v44 = vpack.c.bf16 %v1355_v43, %v1352_v42  ;;  %v1124_v47 = vpack.c.bf16 %v1365_v46, %v1362_v45  ;;  %v1372_v48 = vld [vmem:[%s1233_s23 + $0xf0] sm:$0xff]  ;;  %v1375_v49 = vld [vmem:[%s1233_s23 + $0xf8] sm:$0xff]  ;;  %v251_v6 = vld [vmem:[%s1778_s0 + $0x40] sm:$0xff] }
  0x1c   : > { %1077 = vmatpush1.bf16.msra.mxu0 %v1076_v19  ;;  %v1127_v50 = vpack.c.bf16 %v1375_v49, %v1372_v48  ;;  %v254_v13 = vld [vmem:[%s1778_s0 + $0x58] sm:$0xff]  ;;  %v253_v19 = vld [vmem:[%s1778_s0 + $0x50] sm:$0xff] }
  0x1d   : > { %1107 = vmatpush1.bf16.msra.mxu1 %v1106_v20  ;;  %1078 = vmatprep.subr.bf16.mxu0 %v1178_v2 }
  0x1e   : > { %1108 = vmatprep.subr.bf16.mxu1 %v1178_v2 }
  0x20   : > { %1080 = vmatpush1.bf16.msra.mxu0 %v1079_v25  ;;  %v256_v25 = vld [vmem:[%s1778_s0 + $0x68] sm:$0xff] }
  0x21   : > { %1110 = vmatpush1.bf16.msra.mxu1 %v1109_v26  ;;  %1081 = vmatprep.subr.bf16.mxu0 %v1178_v2 }
  0x22   : > { %1111 = vmatprep.subr.bf16.mxu1 %v1178_v2 }
  0x24   : > { %1083 = vmatpush1.bf16.msra.mxu0 %v1082_v31  ;;  %v255_v31 = vld [vmem:[%s1778_s0 + $0x60] sm:$0xff] }
  0x25   : > { %1113 = vmatpush1.bf16.msra.mxu1 %v1112_v32  ;;  %1084 = vmatprep.subr.bf16.mxu0 %v1178_v2  ;;  %v1028_v32 = vld [vmem:[%s1778_s0 + $0x160] sm:$0xff] }
  0x26   : > { %1114 = vmatprep.subr.bf16.mxu1 %v1178_v2 }
  0x28   : > { %1086 = vmatpush1.bf16.msra.mxu0 %v1085_v37  ;;  %v258_v37 = vld [vmem:[%s1778_s0 + $0x78] sm:$0xff] }
  0x29   : > { %1116 = vmatpush1.bf16.msra.mxu1 %v1115_v38  ;;  %1087 = vmatprep.subr.bf16.mxu0 %v1178_v2  ;;  %v1031_v38 = vld [vmem:[%s1778_s0 + $0x178] sm:$0xff] }
  0x2a   : > { %1117 = vmatprep.subr.bf16.mxu1 %v1178_v2 }
  0x2c   : > { %1089 = vmatpush1.bf16.msra.mxu0 %v1100_v10  ;;  %v1024_v10 = vld [vmem:[%s1778_s0 + $0x140] sm:$0xff] }
  0x2d   : > { %1119 = vmatpush1.bf16.msra.mxu1 %v1118_v41  ;;  %1090 = vmatprep.subr.bf16.mxu0 %v1178_v2  ;;  %v257_v41 = vld [vmem:[%s1778_s0 + $0x70] sm:$0xff] }
  0x2e   : > { %1120 = vmatprep.subr.bf16.mxu1 %v1178_v2 }
  0x30   : > { %1092 = vmatpush1.bf16.msra.mxu0 %v1103_v14  ;;  %v1027_v14 = vld [vmem:[%s1778_s0 + $0x158] sm:$0xff] }
  0x31   : > { %1122 = vmatpush1.bf16.msra.mxu1 %v1121_v44  ;;  %1093 = vmatprep.subr.bf16.mxu0 %v1178_v2  ;;  %v1030_v44 = vld [vmem:[%s1778_s0 + $0x170] sm:$0xff] }
  0x32   : > { %1123 = vmatprep.subr.bf16.mxu1 %v1178_v2 }
  0x34   : > { %1095 = vmatpush1.bf16.msra.mxu0 %v1106_v20  ;;  %v1026_v20 = vld [vmem:[%s1778_s0 + $0x150] sm:$0xff] }
  0x35   : > { %1125 = vmatpush1.bf16.msra.mxu1 %v1124_v47  ;;  %1096 = vmatprep.subr.bf16.mxu0 %v1178_v2  ;;  %v260_v47 = vld [vmem:[%s1778_s0 + $0x88] sm:$0xff] }
  0x36   : > { %1126 = vmatprep.subr.bf16.mxu1 %v1178_v2  ;;  %v1025_v2 = vld [vmem:[%s1778_s0 + $0x148] sm:$0xff] }
  0x38   : > { %1098 = vmatpush1.bf16.msra.mxu0 %v1109_v26  ;;  %v1029_v26 = vld [vmem:[%s1778_s0 + $0x168] sm:$0xff] }
  0x39   : > { %1128 = vmatpush1.bf16.msra.mxu1 %v1127_v50  ;;  %v1033_v50 = vld [vmem:[%s1778_s0 + $0x188] sm:$0xff] }
  0x3b   : > { %389 = vmatmul.mubr.f32.vlgmr.msra.gmra.mrb[0].mxu0 %v243_v51  ;;  %v259_v51 = vld [vmem:[%s1778_s0 + $0x80] sm:$0xff] }
  0x3c   : > { %715 = vmatmul.mubr.f32.vlgmr.msra.gmra.mrb[0].mxu1 %v1016_v52  ;;  %1001 = vmatprep.mubr.msk.f32.mxu0 %vm275_vm0, %v246_v53  ;;  %v1032_v52 = vld [vmem:[%s1778_s0 + $0x180] sm:$0xff]  ;;  %v262_v53 = vld [vmem:[%s1778_s0 + $0x98] sm:$0xff] }
  0x3d   : > { %1049 = vmatprep.mubr.msk.f32.mxu1 %vm275_vm0, %v1019_v54  ;;  %v1035_v54 = vld [vmem:[%s1778_s0 + $0x198] sm:$0xff] }
  0x3f   : > { %394 = vmatmul.mubr.f32.gmra.mrb[2].mxu0 %v245_v55  ;;  %v261_v55 = vld [vmem:[%s1778_s0 + $0x90] sm:$0xff] }
  0x40   : > { %720 = vmatmul.mubr.f32.gmra.mrb[2].mxu1 %v1018_v56  ;;  %1002 = vmatprep.mubr.msk.f32.mxu0 %vm275_vm0, %v248_v57  ;;  %v1034_v56 = vld [vmem:[%s1778_s0 + $0x190] sm:$0xff]  ;;  %v264_v57 = vld [vmem:[%s1778_s0 + $0xa8] sm:$0xff] }
  0x41   : > { %1050 = vmatprep.mubr.msk.f32.mxu1 %vm275_vm0, %v1021_v58  ;;  %v1037_v58 = vld [vmem:[%s1778_s0 + $0x1a8] sm:$0xff] }
  0x43   : > { %399 = vmatmul.mubr.f32.gmra.mrb[4].mxu0 %v247_v59  ;;  %v263_v59 = vld [vmem:[%s1778_s0 + $0xa0] sm:$0xff] }
  0x44   : > { %725 = vmatmul.mubr.f32.gmra.mrb[4].mxu1 %v1020_v60  ;;  %1003 = vmatprep.mubr.msk.f32.mxu0 %vm275_vm0, %v250_v61  ;;  %v1036_v60 = vld [vmem:[%s1778_s0 + $0x1a0] sm:$0xff]  ;;  %v266_v61 = vld [vmem:[%s1778_s0 + $0xb8] sm:$0xff] }
  0x45   : > { %1051 = vmatprep.mubr.msk.f32.mxu1 %vm275_vm0, %v1023_v62  ;;  %v1039_v62 = vld [vmem:[%s1778_s0 + $0x1b8] sm:$0xff] }
  0x47   : > { %404 = vmatmul.mubr.f32.gmra.mrb[6].mxu0 %v249_v63  ;;  %v265_v63 = vld [vmem:[%s1778_s0 + $0xb0] sm:$0xff] }
  0x48   : > { %730 = vmatmul.mubr.f32.gmra.mrb[6].mxu1 %v1022_v0  ;;  %1004 = vmatprep.mubr.msk.f32.mxu0 %vm275_vm0, %v252_v1  ;;  %v1038_v0 = vld [vmem:[%s1778_s0 + $0x1b0] sm:$0xff]  ;;  %v268_v1 = vld [vmem:[%s1778_s0 + $0xc8] sm:$0xff] }
  0x49   : > { %1052 = vmatprep.mubr.msk.f32.mxu1 %vm275_vm0, %v1025_v2  ;;  %v1041_v2 = vld [vmem:[%s1778_s0 + $0x1c8] sm:$0xff] }
  0x4b   : > { %409 = vmatmul.mubr.f32.gmra.mrb[8].mxu0 %v251_v6  ;;  %v267_v6 = vld [vmem:[%s1778_s0 + $0xc0] sm:$0xff] }
  0x4c   : > { %735 = vmatmul.mubr.f32.gmra.mrb[8].mxu1 %v1024_v10  ;;  %1005 = vmatprep.mubr.msk.f32.mxu0 %vm275_vm0, %v254_v13  ;;  %v1040_v10 = vld [vmem:[%s1778_s0 + $0x1c0] sm:$0xff]  ;;  %v270_v13 = vld [vmem:[%s1778_s0 + $0xd8] sm:$0xff] }
  0x4d   : > { %1053 = vmatprep.mubr.msk.f32.mxu1 %vm275_vm0, %v1027_v14  ;;  %v1043_v14 = vld [vmem:[%s1778_s0 + $0x1d8] sm:$0xff] }
  0x4f   : > { %414 = vmatmul.mubr.f32.gmra.mrb[10].mxu0 %v253_v19  ;;  %v269_v19 = vld [vmem:[%s1778_s0 + $0xd0] sm:$0xff] }
  0x50   : > { %740 = vmatmul.mubr.f32.gmra.mrb[10].mxu1 %v1026_v20  ;;  %1006 = vmatprep.mubr.msk.f32.mxu0 %vm275_vm0, %v256_v25  ;;  %v1042_v20 = vld [vmem:[%s1778_s0 + $0x1d0] sm:$0xff]  ;;  %v272_v25 = vld [vmem:[%s1778_s0 + $0xe8] sm:$0xff] }
  0x51   : > { %1054 = vmatprep.mubr.msk.f32.mxu1 %vm275_vm0, %v1029_v26  ;;  %v1045_v26 = vld [vmem:[%s1778_s0 + $0x1e8] sm:$0xff] }
  0x53   : > { %419 = vmatmul.mubr.f32.gmra.mrb[12].mxu0 %v255_v31  ;;  %v271_v31 = vld [vmem:[%s1778_s0 + $0xe0] sm:$0xff] }
  0x54   : > { %745 = vmatmul.mubr.f32.gmra.mrb[12].mxu1 %v1028_v32  ;;  %1007 = vmatprep.mubr.msk.f32.mxu0 %vm275_vm0, %v258_v37  ;;  %v1044_v32 = vld [vmem:[%s1778_s0 + $0x1e0] sm:$0xff]  ;;  %v274_v37 = vld [vmem:[%s1778_s0 + $0xf8] sm:$0xff] }
  0x55   : > { %1055 = vmatprep.mubr.msk.f32.mxu1 %vm275_vm0, %v1031_v38  ;;  %v1047_v38 = vld [vmem:[%s1778_s0 + $0x1f8] sm:$0xff] }
  0x57   : > { %424 = vmatmul.mubr.f32.gmra.mrb[14].mxu0 %v257_v41  ;;  %v273_v41 = vld [vmem:[%s1778_s0 + $0xf0] sm:$0xff] }
  0x58   : > { %750 = vmatmul.mubr.f32.gmra.mrb[14].mxu1 %v1030_v44  ;;  %1008 = vmatprep.mubr.msk.f32.mxu0 %vm275_vm0, %v260_v47  ;;  %v1046_v44 = vld [vmem:[%s1778_s0 + $0x1f0] sm:$0xff] }
  0x59   : > { %1056 = vmatprep.mubr.msk.f32.mxu1 %vm275_vm0, %v1033_v50 }
  0x5b   : > { %429 = vmatmul.mubr.f32.gmra.mrb[16].mxu0 %v259_v51 }
  0x5c   : > { %755 = vmatmul.mubr.f32.gmra.mrb[16].mxu1 %v1032_v52  ;;  %1009 = vmatprep.mubr.msk.f32.mxu0 %vm275_vm0, %v262_v53 }
  0x5d   : > { %1057 = vmatprep.mubr.msk.f32.mxu1 %vm275_vm0, %v1035_v54 }
  0x5f   : > { %434 = vmatmul.mubr.f32.gmra.mrb[18].mxu0 %v261_v55 }
  0x60   : > { %760 = vmatmul.mubr.f32.gmra.mrb[18].mxu1 %v1034_v56  ;;  %1010 = vmatprep.mubr.msk.f32.mxu0 %vm275_vm0, %v264_v57 }
  0x61   : > { %1058 = vmatprep.mubr.msk.f32.mxu1 %vm275_vm0, %v1037_v58 }
  0x63   : > { %439 = vmatmul.mubr.f32.gmra.mrb[20].mxu0 %v263_v59 }
  0x64   : > { %765 = vmatmul.mubr.f32.gmra.mrb[20].mxu1 %v1036_v60  ;;  %1011 = vmatprep.mubr.msk.f32.mxu0 %vm275_vm0, %v266_v61 }
  0x65   : > { %1059 = vmatprep.mubr.msk.f32.mxu1 %vm275_vm0, %v1039_v62 }
  0x67   : > { %444 = vmatmul.mubr.f32.gmra.mrb[22].mxu0 %v265_v63 }
  0x68   : > { %770 = vmatmul.mubr.f32.gmra.mrb[22].mxu1 %v1038_v0  ;;  %1012 = vmatprep.mubr.msk.f32.mxu0 %vm275_vm0, %v268_v1 }
  0x69   : > { %1060 = vmatprep.mubr.msk.f32.mxu1 %vm275_vm0, %v1041_v2 }
  0x6b   : > { %449 = vmatmul.mubr.f32.gmra.mrb[24].mxu0 %v267_v6 }
  0x6c   : > { %775 = vmatmul.mubr.f32.gmra.mrb[24].mxu1 %v1040_v10  ;;  %1013 = vmatprep.mubr.msk.f32.mxu0 %vm275_vm0, %v270_v13 }
  0x6d   : > { %1061 = vmatprep.mubr.msk.f32.mxu1 %vm275_vm0, %v1043_v14 }
  0x6f   : > { %454 = vmatmul.mubr.f32.gmra.mrb[26].mxu0 %v269_v19 }
  0x70   : > { %780 = vmatmul.mubr.f32.gmra.mrb[26].mxu1 %v1042_v20  ;;  %1014 = vmatprep.mubr.msk.f32.mxu0 %vm275_vm0, %v272_v25 }
  0x71   : > { %1062 = vmatprep.mubr.msk.f32.mxu1 %vm275_vm0, %v1045_v26 }
  0x73   : > { %459 = vmatmul.mubr.f32.gmra.mrb[28].mxu0 %v271_v31 }
  0x74   : > { %785 = vmatmul.mubr.f32.gmra.mrb[28].mxu1 %v1044_v32  ;;  %1015 = vmatprep.mubr.msk.f32.mxu0 %vm275_vm0, %v274_v37 }
  0x75   : > { %1063 = vmatprep.mubr.msk.f32.mxu1 %vm275_vm0, %v1047_v38 }
  0x77   : > { %464 = vmatmul.mubr.f32.gmra.mrb[30].mxu0 %v273_v41 }
  0x78   : > { %790 = vmatmul.mubr.f32.gmra.mrb[30].mxu1 %v1046_v44 }
 0x10e   : > { %v390_v47 = vpop.f32.mrb[0].mxu0 }
 0x10f   : > { %v469_v50 = vmul.f32 0.04, %v390_v47  ;;  %v716_v51 = vpop.f32.mrb[0].mxu1  ;;  %v392_v52 = vpop.f32.mrb[1].mxu0 }
 0x110   : > { %v795_v53 = vmul.f32 0.04, %v716_v51  ;;  %v718_v54 = vpop.f32.mrb[1].mxu1 }
 0x111   : > { %501 = vst.msk [vmem:[%s1601_s8] sm:$0xff] %vm275_vm0, %v469_v50  ;;  %v517_v55 = vsub.f32 %v1236_v3, %v469_v50 }
 0x112   : > { %811 = vst.msk [vmem:[%s1601_s8 + $0x80] sm:$0xff] %vm275_vm0, %v795_v53  ;;  %v827_v56 = vsub.f32 %v1276_v17, %v795_v53  ;;  %v395_v57 = vpop.f32.mrb[2].mxu0 }
 0x113   : > { %533 = vst.msk [vmem:[%s1607_s11] sm:$0xff] %vm275_vm0, %v517_v55  ;;  %v470_v58 = vmul.f32 0.04, %v395_v57  ;;  %v721_v59 = vpop.f32.mrb[2].mxu1  ;;  %v397_v60 = vpop.f32.mrb[3].mxu0 }
 0x114   : > { %843 = vst.msk [vmem:[%s1607_s11 + $0x80] sm:$0xff] %vm275_vm0, %v827_v56  ;;  %v796_v61 = vmul.f32 0.04, %v721_v59  ;;  %v723_v62 = vpop.f32.mrb[3].mxu1 }
 0x115   : > { %502 = vst.msk [vmem:[%s1601_s8 + $0x8] sm:$0xff] %vm275_vm0, %v470_v58  ;;  %v518_v3 = vsub.f32 %v1239_v4, %v470_v58 }
 0x116   : > { %812 = vst.msk [vmem:[%s1601_s8 + $0x88] sm:$0xff] %vm275_vm0, %v796_v61  ;;  %v828_v17 = vsub.f32 %v1279_v18, %v796_v61  ;;  %v400_v63 = vpop.f32.mrb[4].mxu0 }
 0x117   : > { %534 = vst.msk [vmem:[%s1607_s11 + $0x8] sm:$0xff] %vm275_vm0, %v518_v3  ;;  %v471_v0 = vmul.f32 0.04, %v400_v63  ;;  %v726_v1 = vpop.f32.mrb[4].mxu1  ;;  %v402_v2 = vpop.f32.mrb[5].mxu0 }
 0x118   : > { %844 = vst.msk [vmem:[%s1607_s11 + $0x88] sm:$0xff] %vm275_vm0, %v828_v17  ;;  %v797_v6 = vmul.f32 0.04, %v726_v1  ;;  %v728_v10 = vpop.f32.mrb[5].mxu1 }
 0x119   : > { %503 = vst.msk [vmem:[%s1601_s8 + $0x10] sm:$0xff] %vm275_vm0, %v471_v0  ;;  %v519_v4 = vsub.f32 %v1250_v8, %v471_v0 }
 0x11a   : > { %813 = vst.msk [vmem:[%s1601_s8 + $0x90] sm:$0xff] %vm275_vm0, %v797_v6  ;;  %v829_v18 = vsub.f32 %v1294_v23, %v797_v6  ;;  %v405_v13 = vpop.f32.mrb[6].mxu0 }
 0x11b   : > { %535 = vst.msk [vmem:[%s1607_s11 + $0x10] sm:$0xff] %vm275_vm0, %v519_v4  ;;  %v472_v14 = vmul.f32 0.04, %v405_v13  ;;  %v731_v19 = vpop.f32.mrb[6].mxu1  ;;  %v407_v20 = vpop.f32.mrb[7].mxu0 }
 0x11c   : > { %845 = vst.msk [vmem:[%s1607_s11 + $0x90] sm:$0xff] %vm275_vm0, %v829_v18  ;;  %v798_v25 = vmul.f32 0.04, %v731_v19  ;;  %v733_v26 = vpop.f32.mrb[7].mxu1 }
 0x11d   : > { %504 = vst.msk [vmem:[%s1601_s8 + $0x18] sm:$0xff] %vm275_vm0, %v472_v14  ;;  %v520_v8 = vsub.f32 %v1253_v9, %v472_v14 }
 0x11e   : > { %814 = vst.msk [vmem:[%s1601_s8 + $0x98] sm:$0xff] %vm275_vm0, %v798_v25  ;;  %v830_v23 = vsub.f32 %v1297_v24, %v798_v25  ;;  %v410_v31 = vpop.f32.mrb[8].mxu0 }
 0x11f   : > { %536 = vst.msk [vmem:[%s1607_s11 + $0x18] sm:$0xff] %vm275_vm0, %v520_v8  ;;  %v473_v32 = vmul.f32 0.04, %v410_v31  ;;  %v736_v37 = vpop.f32.mrb[8].mxu1  ;;  %v412_v38 = vpop.f32.mrb[9].mxu0 }
 0x120   : > { %846 = vst.msk [vmem:[%s1607_s11 + $0x98] sm:$0xff] %vm275_vm0, %v830_v23  ;;  %v799_v41 = vmul.f32 0.04, %v736_v37  ;;  %v738_v44 = vpop.f32.mrb[9].mxu1 }
 0x121   : > { %505 = vst.msk [vmem:[%s1601_s8 + $0x20] sm:$0xff] %vm275_vm0, %v473_v32  ;;  %v521_v9 = vsub.f32 %v1269_v15, %v473_v32 }
 0x122   : > { %815 = vst.msk [vmem:[%s1601_s8 + $0xa0] sm:$0xff] %vm275_vm0, %v799_v41  ;;  %v831_v24 = vsub.f32 %v1312_v29, %v799_v41  ;;  %v415_v47 = vpop.f32.mrb[10].mxu0 }
 0x123   : > { %537 = vst.msk [vmem:[%s1607_s11 + $0x20] sm:$0xff] %vm275_vm0, %v521_v9  ;;  %v474_v50 = vmul.f32 0.04, %v415_v47  ;;  %v741_v51 = vpop.f32.mrb[10].mxu1  ;;  %v417_v52 = vpop.f32.mrb[11].mxu0 }
 0x124   : > { %847 = vst.msk [vmem:[%s1607_s11 + $0xa0] sm:$0xff] %vm275_vm0, %v831_v24  ;;  %v800_v53 = vmul.f32 0.04, %v741_v51  ;;  %v743_v54 = vpop.f32.mrb[11].mxu1 }
 0x125   : > { %506 = vst.msk [vmem:[%s1601_s8 + $0x28] sm:$0xff] %vm275_vm0, %v474_v50  ;;  %v522_v15 = vsub.f32 %v1272_v16, %v474_v50 }
 0x126   : > { %816 = vst.msk [vmem:[%s1601_s8 + $0xa8] sm:$0xff] %vm275_vm0, %v800_v53  ;;  %v832_v29 = vsub.f32 %v1315_v30, %v800_v53  ;;  %v420_v55 = vpop.f32.mrb[12].mxu0 }
 0x127   : > { %538 = vst.msk [vmem:[%s1607_s11 + $0x28] sm:$0xff] %vm275_vm0, %v522_v15  ;;  %v475_v56 = vmul.f32 0.04, %v420_v55  ;;  %v746_v57 = vpop.f32.mrb[12].mxu1  ;;  %v422_v58 = vpop.f32.mrb[13].mxu0 }
 0x128   : > { %848 = vst.msk [vmem:[%s1607_s11 + $0xa8] sm:$0xff] %vm275_vm0, %v832_v29  ;;  %v801_v59 = vmul.f32 0.04, %v746_v57  ;;  %v748_v60 = vpop.f32.mrb[13].mxu1 }
 0x129   : > { %507 = vst.msk [vmem:[%s1601_s8 + $0x30] sm:$0xff] %vm275_vm0, %v475_v56  ;;  %v523_v16 = vsub.f32 %v1287_v21, %v475_v56 }
 0x12a   : > { %817 = vst.msk [vmem:[%s1601_s8 + $0xb0] sm:$0xff] %vm275_vm0, %v801_v59  ;;  %v833_v30 = vsub.f32 %v1330_v35, %v801_v59  ;;  %v425_v61 = vpop.f32.mrb[14].mxu0 }
 0x12b   : > { %539 = vst.msk [vmem:[%s1607_s11 + $0x30] sm:$0xff] %vm275_vm0, %v523_v16  ;;  %v476_v62 = vmul.f32 0.04, %v425_v61  ;;  %v751_v3 = vpop.f32.mrb[14].mxu1  ;;  %v427_v17 = vpop.f32.mrb[15].mxu0 }
 0x12c   : > { %849 = vst.msk [vmem:[%s1607_s11 + $0xb0] sm:$0xff] %vm275_vm0, %v833_v30  ;;  %v802_v63 = vmul.f32 0.04, %v751_v3  ;;  %v753_v0 = vpop.f32.mrb[15].mxu1 }
 0x12d   : > { %508 = vst.msk [vmem:[%s1601_s8 + $0x38] sm:$0xff] %vm275_vm0, %v476_v62  ;;  %v524_v21 = vsub.f32 %v1290_v22, %v476_v62 }
 0x12e   : > { %818 = vst.msk [vmem:[%s1601_s8 + $0xb8] sm:$0xff] %vm275_vm0, %v802_v63  ;;  %v834_v35 = vsub.f32 %v1333_v36, %v802_v63  ;;  %v430_v1 = vpop.f32.mrb[16].mxu0 }
 0x12f   : > { %540 = vst.msk [vmem:[%s1607_s11 + $0x38] sm:$0xff] %vm275_vm0, %v524_v21  ;;  %v477_v2 = vmul.f32 0.04, %v430_v1  ;;  %v756_v6 = vpop.f32.mrb[16].mxu1  ;;  %v432_v10 = vpop.f32.mrb[17].mxu0 }
 0x130   : > { %850 = vst.msk [vmem:[%s1607_s11 + $0xb8] sm:$0xff] %vm275_vm0, %v834_v35  ;;  %v803_v4 = vmul.f32 0.04, %v756_v6  ;;  %v758_v18 = vpop.f32.mrb[17].mxu1 }
 0x131   : > { %509 = vst.msk [vmem:[%s1601_s8 + $0x40] sm:$0xff] %vm275_vm0, %v477_v2  ;;  %v525_v22 = vsub.f32 %v1305_v27, %v477_v2 }
 0x132   : > { %819 = vst.msk [vmem:[%s1601_s8 + $0xc0] sm:$0xff] %vm275_vm0, %v803_v4  ;;  %v835_v36 = vsub.f32 %v1342_v39, %v803_v4  ;;  %v435_v13 = vpop.f32.mrb[18].mxu0 }
 0x133   : > { %541 = vst.msk [vmem:[%s1607_s11 + $0x40] sm:$0xff] %vm275_vm0, %v525_v22  ;;  %v478_v14 = vmul.f32 0.04, %v435_v13  ;;  %v761_v19 = vpop.f32.mrb[18].mxu1  ;;  %v437_v20 = vpop.f32.mrb[19].mxu0 }
 0x134   : > { %851 = vst.msk [vmem:[%s1607_s11 + $0xc0] sm:$0xff] %vm275_vm0, %v835_v36  ;;  %v804_v25 = vmul.f32 0.04, %v761_v19  ;;  %v763_v26 = vpop.f32.mrb[19].mxu1 }
 0x135   : > { %510 = vst.msk [vmem:[%s1601_s8 + $0x48] sm:$0xff] %vm275_vm0, %v478_v14  ;;  %v526_v27 = vsub.f32 %v1308_v28, %v478_v14 }
 0x136   : > { %820 = vst.msk [vmem:[%s1601_s8 + $0xc8] sm:$0xff] %vm275_vm0, %v804_v25  ;;  %v836_v39 = vsub.f32 %v1345_v40, %v804_v25  ;;  %v440_v8 = vpop.f32.mrb[20].mxu0 }
 0x137   : > { %542 = vst.msk [vmem:[%s1607_s11 + $0x48] sm:$0xff] %vm275_vm0, %v526_v27  ;;  %v479_v23 = vmul.f32 0.04, %v440_v8  ;;  %v766_v31 = vpop.f32.mrb[20].mxu1  ;;  %v442_v32 = vpop.f32.mrb[21].mxu0 }
 0x138   : > { %852 = vst.msk [vmem:[%s1607_s11 + $0xc8] sm:$0xff] %vm275_vm0, %v836_v39  ;;  %v805_v37 = vmul.f32 0.04, %v766_v31  ;;  %v768_v38 = vpop.f32.mrb[21].mxu1 }
 0x139   : > { %511 = vst.msk [vmem:[%s1601_s8 + $0x50] sm:$0xff] %vm275_vm0, %v479_v23  ;;  %v527_v28 = vsub.f32 %v1323_v33, %v479_v23 }
 0x13a   : > { %821 = vst.msk [vmem:[%s1601_s8 + $0xd0] sm:$0xff] %vm275_vm0, %v805_v37  ;;  %v837_v40 = vsub.f32 %v1352_v42, %v805_v37  ;;  %v445_v41 = vpop.f32.mrb[22].mxu0 }
 0x13b   : > { %543 = vst.msk [vmem:[%s1607_s11 + $0x50] sm:$0xff] %vm275_vm0, %v527_v28  ;;  %v480_v44 = vmul.f32 0.04, %v445_v41  ;;  %v771_v9 = vpop.f32.mrb[22].mxu1  ;;  %v447_v24 = vpop.f32.mrb[23].mxu0 }
 0x13c   : > { %853 = vst.msk [vmem:[%s1607_s11 + $0xd0] sm:$0xff] %vm275_vm0, %v837_v40  ;;  %v806_v47 = vmul.f32 0.04, %v771_v9  ;;  %v773_v50 = vpop.f32.mrb[23].mxu1 }
 0x13d   : > { %512 = vst.msk [vmem:[%s1601_s8 + $0x58] sm:$0xff] %vm275_vm0, %v480_v44  ;;  %v528_v33 = vsub.f32 %v1326_v34, %v480_v44 }
 0x13e   : > { %822 = vst.msk [vmem:[%s1601_s8 + $0xd8] sm:$0xff] %vm275_vm0, %v806_v47  ;;  %v838_v42 = vsub.f32 %v1355_v43, %v806_v47  ;;  %v450_v51 = vpop.f32.mrb[24].mxu0 }
 0x13f   : > { %544 = vst.msk [vmem:[%s1607_s11 + $0x58] sm:$0xff] %vm275_vm0, %v528_v33  ;;  %v481_v52 = vmul.f32 0.04, %v450_v51  ;;  %v776_v53 = vpop.f32.mrb[24].mxu1  ;;  %v452_v54 = vpop.f32.mrb[25].mxu0 }
 0x140   : > { %854 = vst.msk [vmem:[%s1607_s11 + $0xd8] sm:$0xff] %vm275_vm0, %v838_v42  ;;  %v807_v15 = vmul.f32 0.04, %v776_v53  ;;  %v778_v29 = vpop.f32.mrb[25].mxu1 }
 0x141   : > { %513 = vst.msk [vmem:[%s1601_s8 + $0x60] sm:$0xff] %vm275_vm0, %v481_v52  ;;  %v529_v34 = vsub.f32 %v1242_v5, %v481_v52 }
 0x142   : > { %823 = vst.msk [vmem:[%s1601_s8 + $0xe0] sm:$0xff] %vm275_vm0, %v807_v15  ;;  %v839_v43 = vsub.f32 %v1362_v45, %v807_v15  ;;  %v455_v55 = vpop.f32.mrb[26].mxu0 }
 0x143   : > { %545 = vst.msk [vmem:[%s1607_s11 + $0x60] sm:$0xff] %vm275_vm0, %v529_v34  ;;  %v482_v56 = vmul.f32 0.04, %v455_v55  ;;  %v781_v57 = vpop.f32.mrb[26].mxu1  ;;  %v457_v58 = vpop.f32.mrb[27].mxu0 }
 0x144   : > { %855 = vst.msk [vmem:[%s1607_s11 + $0xe0] sm:$0xff] %vm275_vm0, %v839_v43  ;;  %v808_v59 = vmul.f32 0.04, %v781_v57  ;;  %v783_v60 = vpop.f32.mrb[27].mxu1 }
 0x145   : > { %514 = vst.msk [vmem:[%s1601_s8 + $0x68] sm:$0xff] %vm275_vm0, %v482_v56  ;;  %v530_v5 = vsub.f32 %v1247_v7, %v482_v56 }
 0x146   : > { %824 = vst.msk [vmem:[%s1601_s8 + $0xe8] sm:$0xff] %vm275_vm0, %v808_v59  ;;  %v840_v45 = vsub.f32 %v1365_v46, %v808_v59  ;;  %v460_v16 = vpop.f32.mrb[28].mxu0 }
 0x147   : > { %546 = vst.msk [vmem:[%s1607_s11 + $0x68] sm:$0xff] %vm275_vm0, %v530_v5  ;;  %v483_v30 = vmul.f32 0.04, %v460_v16  ;;  %v786_v61 = vpop.f32.mrb[28].mxu1  ;;  %v462_v62 = vpop.f32.mrb[29].mxu0 }
 0x148   : > { %856 = vst.msk [vmem:[%s1607_s11 + $0xe8] sm:$0xff] %vm275_vm0, %v840_v45  ;;  %v809_v3 = vmul.f32 0.04, %v786_v61  ;;  %v788_v17 = vpop.f32.mrb[29].mxu1 }
 0x149   : > { %515 = vst.msk [vmem:[%s1601_s8 + $0x70] sm:$0xff] %vm275_vm0, %v483_v30  ;;  %v531_v7 = vsub.f32 %v1258_v11, %v483_v30 }
 0x14a   : > { %825 = vst.msk [vmem:[%s1601_s8 + $0xf0] sm:$0xff] %vm275_vm0, %v809_v3  ;;  %v841_v46 = vsub.f32 %v1372_v48, %v809_v3  ;;  %v465_v63 = vpop.f32.mrb[30].mxu0 }
 0x14b   : > { %547 = vst.msk [vmem:[%s1607_s11 + $0x70] sm:$0xff] %vm275_vm0, %v531_v7  ;;  %v484_v0 = vmul.f32 0.04, %v465_v63  ;;  %v791_v21 = vpop.f32.mrb[30].mxu1  ;;  %v467_v35 = vpop.f32.mrb[31].mxu0 }
 0x14c   : > { %857 = vst.msk [vmem:[%s1607_s11 + $0xf0] sm:$0xff] %vm275_vm0, %v841_v46  ;;  %v810_v1 = vmul.f32 0.04, %v791_v21  ;;  %v793_v2 = vpop.f32.mrb[31].mxu1 }
 0x14d   : > { %516 = vst.msk [vmem:[%s1601_s8 + $0x78] sm:$0xff] %vm275_vm0, %v484_v0  ;;  %v532_v6 = vsub.f32 %v1261_v12, %v484_v0 }
 0x14e   : > { %826 = vst.msk [vmem:[%s1601_s8 + $0xf8] sm:$0xff] %vm275_vm0, %v810_v1  ;;  %v842_v11 = vsub.f32 %v1375_v49, %v810_v1 }
 0x14f   : > { %548 = vst.msk [vmem:[%s1607_s11 + $0x78] sm:$0xff] %vm275_vm0, %v532_v6 }
 0x150   : > { %858 = vst.msk [vmem:[%s1607_s11 + $0xf8] sm:$0xff] %vm275_vm0, %v842_v11 }
 0x151 PF: > { %s14_s14 = sadd.s32 1, %s1176_s14   ;;  %s1782_s12 = smov %s1172_s13 }
 0x152   : > { %p11_p5 = scmp.ge.s32.totalorder %s14_s14, 4   ;;  %s1783_s13 = smov %s1785_s15 }
 0x154   :  { %13 = sbr.rel (!%p11_p5) target bundleno = 2 (0x2), region = 71 }

</bundles_post_ra>
